<compile_context>
chip_gen: v5e
topology: v5e:2x2
jax: 0.10.0
libtpu: 0.0.40
codegen_flags: <defaults>
</compile_context>

<pallas_src>
import math

import jax
import jax.numpy as jnp
from jax.experimental import pallas as pl
from jax.experimental.pallas import tpu as pltpu


_TARGET_BLOCK_BYTES = 8 * 1024 * 1024    # ~8 MiB per block buffer
_VMEM_LIMIT_BYTES = 40 * 1024 * 1024     # safe on v5e/v6e/v7x


# ----------------------------- helpers -------------------------------------


def _round_up(v, m):
    return ((v + m - 1) // m) * m


def _sublane_multiple(dtype):
    # Native sublane packing: 8 rows for 4-byte, 16 for bf16, 32 for int8/fp8.
    return max(8, 32 // jnp.dtype(dtype).itemsize)


def _lane_fold_2d(c):
    # Fold G consecutive rows into the lane axis so the lane width is a
    # multiple of 128 (unmasked full-lane vst) when C is narrow.
    if c < 128:
        return 128 // math.gcd(c, 128)
    return 1


def _sublane_fold_4d(c, hw, sub):
    # Split each channel's spatial run into s sublane rows so c*s is a multiple
    # of the native sublane packing; only if hw divides evenly and the lane
    # extent stays >= 128 (never trade lane density for sublane density).
    s = sub // math.gcd(c, sub)          # always a power of two
    while s > 1 and not (hw % s == 0 and hw // s >= 128):
        s //= 2
    return s


# ----------------------------- kernel ---------------------------------------


def _bias_add_kernel(x_ref, b_ref, o_ref):
    # Broadcast add: works for both (TM, L)+(1, L) and (TB, C, HW)+(1, C, 1).
    o_ref[...] = x_ref[...] + b_ref[...]


# ----------------------------- wrappers -------------------------------------


def _addbias_2d(x, bias_row, g, *, block_bytes=_TARGET_BLOCK_BYTES):
    """x: (N, C); bias_row: (1, g*C) pre-tiled.  Returns x + bias  (N, C)."""
    n, c = x.shape
    dt = x.dtype
    itemsize = jnp.dtype(dt).itemsize
    sub = _sublane_multiple(dt)

    # Pad N to a multiple of g so the lane fold is an exact row-major reshape.
    # (g-1 extra rows of traffic at most; keeps every store full-lane.)
    n_pad = _round_up(n, g)
    if n_pad != n:
        x = jnp.pad(x, ((0, n_pad - n), (0, 0)))
    n_eff = n_pad // g
    l_eff = g * c
    x_eff = x.reshape(n_eff, l_eff)

    bytes_per_row = max(1, l_eff * itemsize)
    rows_fit = max(1, block_bytes // bytes_per_row)
    tm = max(sub, (rows_fit // sub) * sub)
    tm = min(tm, n_eff)                        # multiple of sub, or the full dim
    if tm == n_eff and n_eff >= 2 * sub:       # keep >= 2 grid steps (v7x: 2 TCs)
        tm = _round_up((n_eff + 1) // 2, sub)

    out_eff = pl.pallas_call(
        _bias_add_kernel,
        out_shape=jax.ShapeDtypeStruct((n_eff, l_eff), dt),
        grid=(pl.cdiv(n_eff, tm),),
        in_specs=[
            pl.BlockSpec((tm, l_eff), lambda i: (i, 0)),
            pl.BlockSpec((1, l_eff), lambda i: (0, 0)),
        ],
        out_specs=pl.BlockSpec((tm, l_eff), lambda i: (i, 0)),
        compiler_params=pltpu.CompilerParams(
            dimension_semantics=("parallel",),
            vmem_limit_bytes=_VMEM_LIMIT_BYTES,
        ),
    )(x_eff, bias_row)

    out = out_eff.reshape(n_pad, c)
    return out[:n] if n_pad != n else out


def _addbias_4d(x, bias_col, s, *, block_bytes=_TARGET_BLOCK_BYTES):
    """x: (N, C, H, W); bias_col: (1, C*s, 1) pre-repeated for the fold."""
    n, c, h, w = x.shape
    hw = h * w
    dt = x.dtype
    itemsize = jnp.dtype(dt).itemsize
    sub = _sublane_multiple(dt)

    c_eff = c * s
    hw_eff = hw // s
    x_eff = x.reshape(n, c_eff, hw_eff)

    slab_bytes = c_eff * hw_eff * itemsize     # one image's (C_eff, HW_eff) slab

    if slab_bytes <= block_bytes:
        # Case A: small per-image slab -> fold batch images into the block.
        tb = max(1, block_bytes // slab_bytes)
        tb = min(tb, n)
        if n >= 2:
            tb = min(tb, (n + 1) // 2)         # keep >= 2 grid steps (v7x: 2 TCs)
        grid = (pl.cdiv(n, tb),)
        in_specs = [
            pl.BlockSpec((tb, c_eff, hw_eff), lambda i: (i, 0, 0)),
            pl.BlockSpec((1, c_eff, 1), lambda i: (0, 0, 0)),
        ]
        out_spec = pl.BlockSpec((tb, c_eff, hw_eff), lambda i: (i, 0, 0))
        sem = ("parallel",)
    elif c_eff >= 2 * sub and sub * hw_eff * itemsize <= block_bytes:
        # Case B: tile along C with the FULL contiguous HW run per block.
        rows_fit = block_bytes // (hw_eff * itemsize)
        tc = max(sub, (rows_fit // sub) * sub)
        tc = min(tc, c_eff)
        grid = (n, pl.cdiv(c_eff, tc))
        in_specs = [
            pl.BlockSpec((1, tc, hw_eff), lambda i, j: (i, j, 0)),
            pl.BlockSpec((1, tc, 1), lambda i, j: (0, j, 0)),
        ]
        out_spec = pl.BlockSpec((1, tc, hw_eff), lambda i, j: (i, j, 0))
        sem = ("parallel", "parallel")
    else:
        # Case C: C too small to split -> tile HW (lanes) in multiples of 128.
        lanes_fit = max(1, block_bytes // (c_eff * itemsize))
        thw = max(128, (lanes_fit // 128) * 128)
        thw = min(thw, hw_eff)                 # multiple of 128, or the full dim
        grid = (n, pl.cdiv(hw_eff, thw))
        in_specs = [
            pl.BlockSpec((1, c_eff, thw), lambda i, j: (i, 0, j)),
            pl.BlockSpec((1, c_eff, 1), lambda i, j: (0, 0, 0)),
        ]
        out_spec = pl.BlockSpec((1, c_eff, thw), lambda i, j: (i, 0, j))
        sem = ("parallel", "parallel")

    out_eff = pl.pallas_call(
        _bias_add_kernel,
        out_shape=jax.ShapeDtypeStruct((n, c_eff, hw_eff), dt),
        grid=grid,
        in_specs=in_specs,
        out_specs=out_spec,
        compiler_params=pltpu.CompilerParams(
            dimension_semantics=sem,
            vmem_limit_bytes=_VMEM_LIMIT_BYTES,
        ),
    )(x_eff, bias_col)
    return out_eff.reshape(n, c, h, w)


class AddBias:
    """JAX/Pallas port of torch_anatgrad.utils.AddBias."""

    def __init__(self, bias):
        # mirrors nn.Parameter(bias.unsqueeze(1)) -> shape (C, 1)
        self._bias = jnp.asarray(bias)[:, None]
        self._c = int(self._bias.shape[0])
        self._cache = {}  # (path, dtype, fold) -> preprocessed bias

    def _bias_2d(self, dtype, g):
        key = ("2d", jnp.dtype(dtype).name, g)
        b = self._cache.get(key)
        if b is None:
            b = self._bias.reshape(1, self._c).astype(dtype)   # == bias.t().view(1,-1)
            if g > 1:
                b = jnp.tile(b, (1, g))
            self._cache[key] = b
        return b

    def _bias_4d(self, dtype, s):
        key = ("4d", jnp.dtype(dtype).name, s)
        b = self._cache.get(key)
        if b is None:
            col = self._bias[:, 0].astype(dtype)
            if s > 1:
                col = jnp.repeat(col, s)
            b = col.reshape(1, self._c * s, 1)
            self._cache[key] = b
        return b

    def __call__(self, x, *, block_bytes=_TARGET_BLOCK_BYTES):
        if x.ndim == 2:
            g = _lane_fold_2d(x.shape[1])
            return _addbias_2d(x, self._bias_2d(x.dtype, g), g,
                               block_bytes=block_bytes)
        assert x.ndim == 4, "AddBias non-2D path expects NCHW (4-D) input"
        n, c, h, w = x.shape
        s = _sublane_fold_4d(c, h * w, _sublane_multiple(x.dtype))
        return _addbias_4d(x, self._bias_4d(x.dtype, s), s,
                           block_bytes=block_bytes)


# ------------------------------- main ---------------------------------------


if __name__ == "__main__":
    key = jax.random.PRNGKey(0)
    k_bias, k_x4, k_x2, k_x2b, k_xb, k_xc, k_bias32 = jax.random.split(key, 7)

    C = 4
    bias = jax.random.normal(k_bias, (C,), dtype=jnp.float32)
    mod = AddBias(bias)

    # 4-D path (NCHW conv activation): case A (batch-folded block) + sublane fold.
    x4 = jax.random.normal(k_x4, (2, C, 16, 16), dtype=jnp.float32)
    y4 = jax.block_until_ready(mod(x4))
    ref4 = x4 + bias.reshape(1, C, 1, 1)

    # 2-D path, N NOT divisible by the lane-fold factor: padded lane-dense path.
    x2 = jax.random.normal(k_x2, (2, C), dtype=jnp.float32)
    y2 = jax.block_until_ready(mod(x2))
    ref2 = x2 + bias.reshape(1, C)

    # 2-D path, N divisible by the fold factor: unpadded lane-dense path.
    x2b = jax.random.normal(k_x2b, (256, C), dtype=jnp.float32)
    y2b = jax.block_until_ready(mod(x2b))
    ref2b = x2b + bias.reshape(1, C)

    # 4-D path, case B (channel-tiled, contiguous HW) forced via a tiny budget.
    C32 = 32
    bias32 = jax.random.normal(k_bias32, (C32,), dtype=jnp.float32)
    mod32 = AddBias(bias32)
    xb = jax.random.normal(k_xb, (1, C32, 16, 16), dtype=jnp.float32)
    yb = jax.block_until_ready(mod32(xb, block_bytes=16 * 1024))
    refb = xb + bias32.reshape(1, C32, 1, 1)

    # 4-D path, case C (HW lane-tiled) forced via a tiny budget.
    xc = jax.random.normal(k_xc, (1, C, 32, 32), dtype=jnp.float32)
    yc = jax.block_until_ready(mod(xc, block_bytes=8 * 1024))
    refc = xc + bias.reshape(1, C, 1, 1)

    assert y4.shape == x4.shape and y4.dtype == x4.dtype
    assert y2.shape == x2.shape and y2.dtype == x2.dtype
    assert y2b.shape == x2b.shape and y2b.dtype == x2b.dtype
    assert yb.shape == xb.shape and yb.dtype == xb.dtype
    assert yc.shape == xc.shape and yc.dtype == xc.dtype
    assert jnp.allclose(y4, ref4, atol=1e-6, rtol=1e-6)
    assert jnp.allclose(y2, ref2, atol=1e-6, rtol=1e-6)
    assert jnp.allclose(y2b, ref2b, atol=1e-6, rtol=1e-6)
    assert jnp.allclose(yb, refb, atol=1e-6, rtol=1e-6)
    assert jnp.allclose(yc, refc, atol=1e-6, rtol=1e-6)

    print("KERNEL_OK")
</pallas_src>

<mosaic_0001>
module attributes {stable_mosaic.version = 11 : i64} {
  func.func @_bias_add_kernel(%arg0: i32, %arg1: memref<1x8x128xf32, #tpu.memory_space<vmem>>, %arg2: memref<1x8x1xf32, #tpu.memory_space<vmem>>, %arg3: memref<1x8x128xf32, #tpu.memory_space<vmem>>) attributes {dimension_semantics = [#tpu.dimension_semantics<parallel>], iteration_bounds = array<i64: 2>, scalar_prefetch = 0 : i64, scratch_operands = 0 : i64, tpu.core_type = #tpu.core_type<tc>, window_params = [{transform_indices = @transform_0, window_bounds = array<i64: 1, 8, 128>}, {pipeline_mode = #tpu.pipeline_mode<synchronous>, transform_indices = @transform_1, window_bounds = array<i64: 1, 8, 1>}, {transform_indices = @transform_2, window_bounds = array<i64: 1, 8, 128>}]} {
    %c0 = arith.constant 0 : index
    %c0_0 = arith.constant 0 : index
    %c0_1 = arith.constant 0 : index
    %0 = vector.load %arg1[%c0, %c0_0, %c0_1] : memref<1x8x128xf32, #tpu.memory_space<vmem>>, vector<1x8x128xf32>
    %c0_2 = arith.constant 0 : index
    %c0_3 = arith.constant 0 : index
    %c0_4 = arith.constant 0 : index
    %1 = vector.load %arg2[%c0_2, %c0_3, %c0_4] : memref<1x8x1xf32, #tpu.memory_space<vmem>>, vector<1x8x1xf32>
    %2 = vector.broadcast %1 : vector<1x8x1xf32> to vector<1x8x128xf32>
    %3 = arith.addf %0, %2 : vector<1x8x128xf32>
    %c0_5 = arith.constant 0 : index
    %c0_6 = arith.constant 0 : index
    %c0_7 = arith.constant 0 : index
    %4 = vector.load %arg3[%c0_5, %c0_6, %c0_7] : memref<1x8x128xf32, #tpu.memory_space<vmem>>, vector<1x8x128xf32>
    tpu.vector_store %arg3[%c0_5, %c0_6, %c0_7], %3 {strides = array<i32>} : memref<1x8x128xf32, #tpu.memory_space<vmem>>, vector<1x8x128xf32>,
    return
  }
  func.func @transform_0(%arg0: i32) -> (i32, i32, i32) {
    %c0_i32 = arith.constant 0 : i32
    %c0_i32_0 = arith.constant 0 : i32
    %c0_i32_1 = arith.constant 0 : i32
    return %arg0, %c0_i32, %c0_i32_0 : i32, i32, i32
  }
  func.func @transform_1(%arg0: i32) -> (i32, i32, i32) {
    %c0_i32 = arith.constant 0 : i32
    %c0_i32_0 = arith.constant 0 : i32
    %c0_i32_1 = arith.constant 0 : i32
    %c0_i32_2 = arith.constant 0 : i32
    return %c0_i32, %c0_i32_0, %c0_i32_1 : i32, i32, i32
  }
  func.func @transform_2(%arg0: i32) -> (i32, i32, i32) {
    %c0_i32 = arith.constant 0 : i32
    %c0_i32_0 = arith.constant 0 : i32
    %c0_i32_1 = arith.constant 0 : i32
    return %arg0, %c0_i32, %c0_i32_0 : i32, i32, i32
  }
}

</mosaic_0001>

<bundles_post_ra>
// kernel: tpu_custom_call.1
= control target key start
LH: loop header
LB: loop body
LE: loop exit
PB: predicated region body
PF: predicated region fallthrough
CT: control target
= control target key end

     0   :  { %7 = vsyncpa [#allocation3], 0  ;;  %s560_s0 = inlined_call_operand.hbm [shape: f32[2,8,128], index: 0, kind: input, shape index: {}]   ;;  %s561_s1 = inlined_call_operand.vmem [shape: f32[1,8,1], index: 1, kind: input, shape index: {}]   ;;  %s562_s2 = inlined_call_operand.hbm [shape: f32[2,8,128], index: 2, kind: output, shape index: {}]  }
   0x1   :  { %9 = vsyncpa [#allocation3 + $0x1], 0 }
   0x2   :  { %10 = vsyncpa [#allocation4], 0 }
   0x3   :  { %12 = vsyncpa [#allocation4 + $0x1], 0  ;;  %s430_s9 = smov 0   ;;  %s432_s10 = smov 0  }
   0x4   :  { %s434_s11 = smov 0   ;;  %s436_s12 = smov 0  }
   0x5 LB: > { %s451_s13 = sadd.s32 4294967295, %s412_s12   ;;  %s256_s14 = sadd.s32 4294967294, %s412_s12   ;;  %s412_s12 = sphi %s436_s12, %s572_s12   ;;  %s408_s11 = sphi %s434_s11, %s571_s11   ;;  %s404_s10 = sphi %s432_s10, %s570_s10   ;;  %s400_s9 = sphi %s430_s9, %s569_s9  }
   0x6   : > { %s455_s15 = sadd.s32 1, %s412_s12   ;;  %s25_s16 = sadd.s32 1, %s408_s11 }
   0x7   : > { %s22_s17 = ssub.s32 %s412_s12, %s455_s15  ;;  %p32_p0 = scmp.ne.s32.totalorder %s408_s11, %s404_s10 }
   0x8   : > { %p23_p1 = scmp.eq.s32.totalorder %s22_s17, 0  ;;  %p33_p2 = scmp.eq.s32.totalorder %s412_s12, 0 }
   0x9   : > { %p38_p3 = scmp.ne.s32.totalorder %s404_s10, %s400_s9  ;;  %p39_p4 = scmp.eq.s32.totalorder %s451_s13, 0 }
   0xa   : > { %s467_s18 = scalar_select %p23_p1, %s408_s11, %s25_s16  }
   0xb   : > { %p469_p5 = por %p33_p2, %p32_p0  ;;  %p473_p6 = por %p39_p4, %p38_p3 }
   0xc   : > { %p83_p7 = scmp.eq.s32.totalorder %s451_s13, 1  ;;  %p89_p8 = scmp.eq.s32.totalorder %s256_s14, 1 }
   0xd   : > { %p280_p10 = scmp.lt.s32.totalorder %s412_s12, 2  ;;  %s112_s23 = sand.u32 1, %s408_s11  }
   0xe   : > { %p480_p11 = por %p83_p7, %p32_p0  ;;  %p484_p12 = por %p89_p8, %p38_p3 }
   0xf   : > { %s260_s24 = sshll.u32 %s412_s12, 3  ;;  %s259_s25 = sshll.u32 %s112_s23, 3 }
  0x10   : > { %s120_s28 = scalar_lea.hbm %s560_s0, %s260_s24  ;;  %s116_s30 = scalar_lea.vmem [#allocation2], %s259_s25 }
  0x11   : > { %s122_s29 = sshll.u32 %s120_s28, 4  ;;  %s124_s3 = sshll.u32 %s116_s30, 4  ;;  %s123_s29 = int_to_ptr.hbm [resolvable:$true] %s122_s29  ;;  %s125_s3 = int_to_ptr.vmem [resolvable:$true] %s124_s3 }
  0x12   : > { %p495_p13 = pnand %p280_p10, %p469_p5  ;;  %p261_p0 = scmp.ge.s32.totalorder %s412_s12, 1 }
  0x13   : > { %p129_p1 = scmp.lt.s32.totalorder %s412_s12, 3  ;;  %s113_s5 = scalar_lea.sflag [#allocation3], %s112_s23 }
  0x14   : > { %s316_s6 = sshra.s32 %s123_s29, 4  ;;  %p320_p3 = pneg %p495_p13  ;;  %s317_s6 = int_to_ptr.hbm [resolvable:$true] %s316_s6 }
  0x15   : > { %s318_s7 = scalar_lea.hbm %s317_s6, 8  ;;  %s323_s16 = scalar_lea.hbm %s560_s0, 16 }
  0x16   : > { %p319_p2 = scmp.ne.s32.totalorder %s317_s6, %s318_s7  ;;  %p324_p5 = scmp.lt.s32.totalorder %s317_s6, %s560_s0 }
  0x17   : > { %p325_p8 = scmp.lt.s32.totalorder %s323_s16, %s318_s7 }
  0x18   : > { %p321_p4 = pnand %p320_p3, %p319_p2 }
  0x19   : > { %p326_p10 = por %p325_p8, %p324_p5 }
  0x1a   : > { %p322_p7 = pneg %p321_p4 }
  0x1c   : > { %p327_p9 = pnand %p326_p10, %p322_p7 }
  0x1e   : > { %330 = shalt.err (!%p327_p9)
}
  0x1f   : > { %275 = dma.hbm_to_vmem [thread:$0]  (!%p495_p13), %s123_s29, 128, %s125_s3, %s113_s5  }
  0x20   : > { %p130_p2 = pnand %p261_p0, %p129_p1 }
  0x21   : > { %s516_s23 = sand.u32 (!%p130_p2), 1, %s404_s10  }
  0x22   : > { %133 = sbr.rel (%p130_p2) target bundleno = 162 (0xa2), region = 28  ;;  %s262_s24 = sshll.u32 (!%p130_p2), %s516_s23, 3 }
  0x23   : > { %s136_s25 = scalar_lea.sflag (!%p130_p2), [#allocation3], %s516_s23  ;;  %s139_s26 = scalar_lea.vmem (!%p130_p2), [#allocation2], %s262_s24 }
  0x27   : > { %391 = dma.done.wait (%p473_p6), %s136_s25, 128  }
  0x28   : > { %393 = vsyncadd (%p473_p6), %s136_s25, 4294967168  ;;  %v414_v0 = vmov 0   ;;  %v162_v1 = vld [vmem:[%s561_s1] sm:$0xff]  ;;  %s265_s29 = sshll.u32 %s451_s13, 3  ;;  %s160_s5 = scalar_lea.vmem [#allocation5], %s262_s24 }
  0x29   : > { %315 = vset.pattern.permute.xlu0 %v414_v0  ;;  %s181_s4 = scalar_lea.hbm %s562_s2, %s265_s29  ;;  %v161_v2 = vld [vmem:[%s139_s26] sm:$0xff]  ;;  %s183_s6 = sshll.u32 %s160_s5, 4  ;;  %s184_s6 = int_to_ptr.vmem [resolvable:$true] %s183_s6 }
  0x2a   : > { %165 = vperm.xlu0 %315, %v162_v1   ;;  %s185_s20 = sshll.u32 %s181_s4, 4  ;;  %s171_s7 = scalar_lea.sflag [#allocation4], %s516_s23  ;;  %s186_s20 = int_to_ptr.hbm [resolvable:$true] %s185_s20 }
  0x2b   : > { %s360_s8 = sshra.s32 %s186_s20, 4  ;;  %s366_s17 = scalar_lea.hbm %s562_s2, 16  ;;  %s361_s8 = int_to_ptr.hbm [resolvable:$true] %s360_s8 }
  0x2c   : > { %s362_s14 = scalar_lea.hbm %s361_s8, 8  ;;  %p367_p0 = scmp.lt.s32.totalorder %s361_s8, %s562_s2 }
  0x2d   : > { %p363_p6 = scmp.ne.s32.totalorder %s361_s8, %s362_s14  ;;  %p368_p1 = scmp.lt.s32.totalorder %s366_s17, %s362_s14 }
  0x2f   : > { %p364_p9 = pnand %p363_p6, %p480_p11  ;;  %p369_p3 = por %p368_p1, %p367_p0 }
  0x31   : > { %p365_p13 = pneg %p364_p9 }
  0x33   : > { %p370_p4 = pnand %p369_p3, %p365_p13 }
  0x9c   : > { %v166_v3 = vpop.permute.xlu0 %165 }
  0x9d   : > { %v168_v4 = vadd.f32 %v166_v3, %v161_v2 }
  0x9f   : > { %169 = vst [vmem:[%s160_s5] sm:$0xff] %v168_v4 }
  0xa0   : > { %373 = shalt.err (!%p370_p4)
}
  0xa1   : > { %270 = dma.vmem_to_hbm [thread:$0]  (%p480_p11), %s184_s6, 128, %s186_s20, %s171_s7  }
  0xa2 PF: > { %s197_s23 = sand.u32 1, %s400_s9   ;;  %p568_p7 = scmp.ge.s32.totalorder %s412_s12, 2 }
  0xa3   : > { %s198_s25 = scalar_lea.sflag [#allocation4], %s197_s23 }
  0xa4   : > { %p277_p5 = pnand %p568_p7, %p484_p12 }
  0xa6   : > { %p278_p8 = pneg %p277_p5 }
  0xa8   : > { %395 = dma.done.wait (%p278_p8), %s198_s25, 128  }
  0xa9   : > { %397 = vsyncadd (%p278_p8), %s198_s25, 4294967168  ;;  %p15_p10 = scmp.ge.s32.totalorder %s455_s15, 4   ;;  %s569_s9 = smov %s404_s10 }
  0xaa   : > { %s570_s10 = smov %s408_s11  ;;  %s571_s11 = smov %s467_s18 }
  0xab   : > { %s572_s12 = smov %s455_s15  ;;  %17 = sbr.rel (!%p15_p10) target bundleno = 5 (0x5), region = 73 }
  0xb0   :  { %204 = vsyncpa [#allocation3], 1 }
  0xb1   :  { %206 = vsyncpa [#allocation3 + $0x1], 1 }
  0xb2   :  { %207 = vsyncpa [#allocation4], 1 }
  0xb3   :  { %209 = vsyncpa [#allocation4 + $0x1], 1 }

</bundles_post_ra>
